<compile_context>
chip_gen: v7x
topology: tpu7x:2x2x1
jax: 0.10.0
libtpu: 0.0.40
codegen_flags: <defaults>
</compile_context>

<pallas_src>
import functools

import jax
import jax.numpy as jnp
from jax.experimental import pallas as pl
from jax.experimental.pallas import tpu as pltpu


# ---------------------------------------------------------------------------
# Hardware introspection (best effort — safe fallbacks everywhere).
# ---------------------------------------------------------------------------
def _tpu_topology():
    """Best-effort (physical VMEM bytes per TensorCore, TensorCores per chip)."""
    vmem = None
    cores = 1
    try:
        info = pltpu.get_tpu_info()
        for attr in ("vmem_capacity_bytes", "vmem_size_bytes", "vmem_bytes"):
            val = getattr(info, attr, None)
            if val:
                vmem = int(val)
                break
    except Exception:
        pass
    kind = ""
    try:
        kind = jax.devices()[0].device_kind.lower()
    except Exception:
        pass

    if "v7" in kind:
        cores = 2
        vmem = min(vmem, 64 << 20) if vmem else (64 << 20)   # 64 MiB per TC
    elif ("lite" in kind) or ("v5e" in kind) or ("v6e" in kind) or ("v6" in kind):
        cores = 1                                            # single TC per chip
        vmem = vmem or (128 << 20)
    elif ("v4" in kind) or ("v5p" in kind):
        cores = 2                                            # megacore
        vmem = vmem or (128 << 20)
    else:
        vmem = vmem or (64 << 20)        # unknown: assume the smallest VMEM
        if vmem <= (96 << 20):
            cores = 2                    # small per-TC VMEM => dual-TC part
    return vmem, cores


def _sizing():
    vmem, cores = _tpu_topology()
    # HBM-bound streaming kernel: big blocks amortize the ~0.35us/step overhead
    # and keep DMAs long.  ~vmem/6 leaves room for double-buffered in + out
    # plus weights / internal scratch:  ~21 MiB on v5e/v6e, ~10.7 MiB on v7x.
    block_budget = min(max(vmem // 6, 6 << 20), 24 << 20)
    # Scoped-VMEM ceiling: generous on 128 MiB parts, ~12 MiB headroom on v7x.
    vmem_cap = min(100 << 20, max(vmem - (12 << 20), 16 << 20))
    return block_budget, vmem_cap, cores


def _pick_batch_tile(n, per_image_bytes, budget_bytes, n_cores):
    """Largest divisor of n whose block fits the VMEM budget.  On dual-TC chips
    keep >= 2 grid steps per TensorCore (when n permits) so both cores get work
    AND BlockSpec double-buffering still has something to overlap; on
    single-TC chips there is no guard (maximize the block)."""
    min_steps = min(n, 2 * n_cores) if n_cores > 1 else 1
    best = 1
    for b in range(1, n + 1):
        if n % b:
            continue
        if b * per_image_bytes > budget_bytes:
            break                      # block bytes only grow with b
        if n // b < min_steps:
            continue
        best = b
    return best


def _pick_hw_chunk(hw, c, itemsize, budget_bytes):
    """Largest 128-multiple divisor of hw whose (1, C, chunk) block fits the
    budget; falls back to the full extent if hw has no 128-multiple divisor."""
    best = None
    ck = 128
    while ck <= hw:
        if hw % ck == 0 and c * ck * itemsize <= budget_bytes:
            best = ck
        ck += 128
    return best if best is not None else hw


# ---------------------------------------------------------------------------
# In-kernel helpers.
# ---------------------------------------------------------------------------
def _mlp(v, w1t, w2t):
    """fc2(relu(fc1(v))) for the shared 1x1-conv MLP.  v: (B, C) f32."""
    h = jnp.maximum(jnp.dot(v, w1t, preferred_element_type=jnp.float32), 0.0)
    return jnp.dot(h, w2t, preferred_element_type=jnp.float32)


def _pooled_sum_max(x_ref):
    """Per-(batch, channel) sum and max over the lane (HW) axis.

    When HW is a 128-multiple the reduction runs as a chunked fori_loop so each
    x vreg is read from VMEM once for BOTH pools (the whole kernel is then
    2 vld + 1 vst per vreg instead of 3 vld + 1 vst)."""
    b, c, hw = x_ref.shape
    if hw % 128 == 0 and hw >= 256:
        ck = 128
        while ck * 2 <= 1024 and hw % (ck * 2) == 0 and hw // (ck * 2) >= 2:
            ck *= 2
        n_chunks = hw // ck

        def body(i, carry):
            s, m = carry
            start = pl.multiple_of(i * ck, 128)
            chunk = x_ref[:, :, pl.ds(start, ck)]
            s = s + jnp.sum(chunk, axis=-1, dtype=jnp.float32)
            m = jnp.maximum(m, jnp.max(chunk, axis=-1).astype(jnp.float32))
            return s, m

        init = (jnp.zeros((b, c), jnp.float32),
                jnp.full((b, c), -jnp.inf, jnp.float32))
        return jax.lax.fori_loop(0, n_chunks, body, init)

    x = x_ref[...]
    return (jnp.sum(x, axis=-1, dtype=jnp.float32),
            jnp.max(x, axis=-1).astype(jnp.float32))


# ---------------------------------------------------------------------------
# Kernels.
# ---------------------------------------------------------------------------
def _fused_kernel(x_ref, w1t_ref, w2t_ref, o_ref):
    # x_ref: (B, C, HW) NCHW-native block; w1t: (C, Ch); w2t: (Ch, C).
    _, _, hw = x_ref.shape
    s, mx = _pooled_sum_max(x_ref)                    # (B, C) f32 each
    avg = s * (1.0 / hw)
    w1t = w1t_ref[...]
    w2t = w2t_ref[...]
    # Two small dots + add (no sublane concat of avg/max needed).
    att = jax.nn.sigmoid(_mlp(avg, w1t, w2t) + _mlp(mx, w1t, w2t))   # (B, C)
    # Broadcast along the lane (HW) axis; multiply in the input dtype so bf16
    # inputs never materialize an f32 slab.
    attb = att.astype(x_ref.dtype)[:, :, None]
    o_ref[...] = (x_ref[...] * attb).astype(o_ref.dtype)


def _pool_mlp_kernel(x_ref, w1t_ref, w2t_ref, att_ref, sum_sc, max_sc, *, inv_hw):
    # Grid: (batch tiles, HW chunks); HW axis is a reduction ("arbitrary").
    h = pl.program_id(1)

    @pl.when(h == 0)
    def _():
        sum_sc[...] = jnp.zeros_like(sum_sc)
        max_sc[...] = jnp.full_like(max_sc, -jnp.inf)

    chunk = x_ref[...]                                  # (B, C, hw_chunk)
    sum_sc[...] += jnp.sum(chunk, axis=-1, dtype=jnp.float32)
    max_sc[...] = jnp.maximum(max_sc[...],
                              jnp.max(chunk, axis=-1).astype(jnp.float32))

    @pl.when(h == pl.num_programs(1) - 1)
    def _():
        w1t = w1t_ref[...]
        w2t = w2t_ref[...]
        avg = sum_sc[...] * inv_hw
        att = jax.nn.sigmoid(_mlp(avg, w1t, w2t) + _mlp(max_sc[...], w1t, w2t))
        att_ref[...] = att[:, :, None]                  # (B, C, 1) f32


def _apply_kernel(x_ref, att_ref, o_ref):
    att = att_ref[...].astype(x_ref.dtype)              # (B, C, 1)
    o_ref[...] = (x_ref[...] * att).astype(o_ref.dtype)


# ---------------------------------------------------------------------------
# Wrappers.
# ---------------------------------------------------------------------------
def _channel_attention_fused(x, w1t, w2t, *, block_budget, vmem_cap, n_cores):
    N, C, HW = x.shape
    Ch = w1t.shape[1]
    itemsize = jnp.dtype(x.dtype).itemsize
    per_image = C * HW * itemsize

    b_tile = _pick_batch_tile(N, per_image, block_budget, n_cores)
    block_bytes = b_tile * per_image
    vmem_limit = min(max(4 * block_bytes + (4 << 20), 16 << 20), vmem_cap)

    cost = pl.CostEstimate(
        flops=3 * N * C * HW + 8 * N * C * Ch,
        transcendentals=2 * N * C,
        bytes_accessed=2 * N * C * HW * itemsize + w1t.nbytes + w2t.nbytes,
    )

    return pl.pallas_call(
        _fused_kernel,
        out_shape=jax.ShapeDtypeStruct((N, C, HW), x.dtype),
        grid_spec=pltpu.PrefetchScalarGridSpec(
            num_scalar_prefetch=0,
            grid=(N // b_tile,),
            in_specs=[
                pl.BlockSpec((b_tile, C, HW), lambda n: (n, 0, 0)),
                pl.BlockSpec((C, Ch), lambda n: (0, 0)),
                pl.BlockSpec((Ch, C), lambda n: (0, 0)),
            ],
            out_specs=pl.BlockSpec((b_tile, C, HW), lambda n: (n, 0, 0)),
        ),
        compiler_params=pltpu.CompilerParams(
            dimension_semantics=("parallel",),
            vmem_limit_bytes=vmem_limit),
        cost_estimate=cost,
    )(x, w1t, w2t)


def _channel_attention_chunked(x, w1t, w2t, *, block_budget, vmem_cap, n_cores):
    """Large-feature-map path: per-image slab exceeds the block budget, so HW
    is tiled inside the grid (pool pass + apply pass)."""
    del n_cores  # batch axis already has N (>=1 per-image) parallel steps
    N, C, HW = x.shape
    Ch = w1t.shape[1]
    itemsize = jnp.dtype(x.dtype).itemsize

    hw_chunk = _pick_hw_chunk(HW, C, itemsize, block_budget)
    n_hw = HW // hw_chunk
    b_tile = 1                               # per-image slabs are large here
    chunk_bytes = b_tile * C * hw_chunk * itemsize
    vmem_limit = min(max(6 * chunk_bytes + (4 << 20), 16 << 20), vmem_cap)

    x_bytes = N * C * HW * itemsize
    att_bytes = N * C * 4

    # Pass 1: pooled sum / max over HW chunks + shared MLP -> (N, C, 1) f32.
    pool_cost = pl.CostEstimate(
        flops=2 * N * C * HW + 8 * N * C * Ch,
        transcendentals=2 * N * C,
        bytes_accessed=x_bytes + att_bytes + w1t.nbytes + w2t.nbytes,
    )
    att = pl.pallas_call(
        functools.partial(_pool_mlp_kernel, inv_hw=1.0 / HW),
        out_shape=jax.ShapeDtypeStruct((N, C, 1), jnp.float32),
        grid_spec=pltpu.PrefetchScalarGridSpec(
            num_scalar_prefetch=0,
            grid=(N // b_tile, n_hw),
            in_specs=[
                pl.BlockSpec((b_tile, C, hw_chunk), lambda n, h: (n, 0, h)),
                pl.BlockSpec((C, Ch), lambda n, h: (0, 0)),
                pl.BlockSpec((Ch, C), lambda n, h: (0, 0)),
            ],
            out_specs=pl.BlockSpec((b_tile, C, 1), lambda n, h: (n, 0, 0)),
            scratch_shapes=[pltpu.VMEM((b_tile, C), jnp.float32),
                            pltpu.VMEM((b_tile, C), jnp.float32)],
        ),
        compiler_params=pltpu.CompilerParams(
            dimension_semantics=("parallel", "arbitrary"),
            vmem_limit_bytes=vmem_limit),
        cost_estimate=pool_cost,
    )(x, w1t, w2t)

    # Pass 2: lane-dense broadcast multiply.
    apply_cost = pl.CostEstimate(
        flops=N * C * HW,
        transcendentals=0,
        bytes_accessed=2 * x_bytes + att_bytes,
    )
    return pl.pallas_call(
        _apply_kernel,
        out_shape=jax.ShapeDtypeStruct((N, C, HW), x.dtype),
        grid_spec=pltpu.PrefetchScalarGridSpec(
            num_scalar_prefetch=0,
            grid=(N // b_tile, n_hw),
            in_specs=[
                pl.BlockSpec((b_tile, C, hw_chunk), lambda n, h: (n, 0, h)),
                pl.BlockSpec((b_tile, C, 1), lambda n, h: (n, 0, 0)),
            ],
            out_specs=pl.BlockSpec((b_tile, C, hw_chunk), lambda n, h: (n, 0, h)),
        ),
        compiler_params=pltpu.CompilerParams(
            dimension_semantics=("parallel", "parallel"),
            vmem_limit_bytes=vmem_limit),
        cost_estimate=apply_cost,
    )(x, att)


def channel_attention(x_nchw, w1, w2, *, block_budget_bytes=None):
    """x_nchw: (N, C, H, W).  w1: (Ch, C, 1, 1), w2: (C, Ch, 1, 1)."""
    N, C, H, W = x_nchw.shape
    HW = H * W

    # NCHW-native: (N, C, H, W) -> (N, C, HW) is a free view (no transpose, no
    # extra HBM pass).  Squeeze + pre-transpose the tiny 1x1-conv weights.
    x = x_nchw.reshape(N, C, HW)
    w1t = jnp.transpose(w1[:, :, 0, 0], (1, 0))   # (C, Ch)
    w2t = jnp.transpose(w2[:, :, 0, 0], (1, 0))   # (Ch, C)

    block_budget, vmem_cap, n_cores = _sizing()
    if block_budget_bytes is not None:
        block_budget = block_budget_bytes

    itemsize = jnp.dtype(x.dtype).itemsize
    per_image = C * HW * itemsize

    # TODO(synk): for HW < 128 (7x7 / 14x14 CBAM stages) the lane axis is padded
    # to 128 and output stores become masked partial stores; folding channels
    # into the lane axis (free view (N, C/g, g*HW)) with segmented lane
    # reductions/broadcasts would restore lane-dense stores for those layers.
    if per_image <= block_budget:
        out = _channel_attention_fused(x, w1t, w2t, block_budget=block_budget,
                                       vmem_cap=vmem_cap, n_cores=n_cores)
    else:
        out = _channel_attention_chunked(x, w1t, w2t, block_budget=block_budget,
                                         vmem_cap=vmem_cap, n_cores=n_cores)
    return out.reshape(N, C, H, W)


def channel_attention_ref(x, w1, w2):
    """Pure-JAX reference matching the PyTorch forward (NCHW)."""
    w1m = w1[:, :, 0, 0]   # (Ch, C)
    w2m = w2[:, :, 0, 0]   # (C, Ch)
    avg = jnp.mean(x, axis=(2, 3))                        # (N, C)
    mx = jnp.max(x, axis=(2, 3))                          # (N, C)

    def mlp(v):
        return jnp.maximum(v @ w1m.T, 0.0) @ w2m.T

    att = jax.nn.sigmoid(mlp(avg) + mlp(mx))              # (N, C)
    return att[:, :, None, None] * x


if __name__ == "__main__":
    # Small, deterministic example consistent with ratio=16.
    N, C, H, W = 2, 128, 16, 16
    ratio = 16
    Ch = C // ratio

    key = jax.random.PRNGKey(0)
    kx, k1, k2 = jax.random.split(key, 3)
    x = jax.random.normal(kx, (N, C, H, W), dtype=jnp.float32)
    w1 = jax.random.normal(k1, (Ch, C, 1, 1), dtype=jnp.float32) * 0.1
    w2 = jax.random.normal(k2, (C, Ch, 1, 1), dtype=jnp.float32) * 0.1

    ref = channel_attention_ref(x, w1, w2)

    # Fused (full-slab) path.
    out = jax.block_until_ready(channel_attention(x, w1, w2))
    assert out.shape == (N, C, H, W)
    assert jnp.allclose(out, ref, atol=1e-4, rtol=1e-4), "fused path mismatch"

    # Chunked fallback path (forced via a tiny block budget) — exercises the
    # large-feature-map code that the full-slab design cannot hold on v7x.
    out2 = jax.block_until_ready(
        channel_attention(x, w1, w2, block_budget_bytes=64 << 10))
    assert jnp.allclose(out2, ref, atol=1e-4, rtol=1e-4), "chunked path mismatch"

    print("KERNEL_OK")
</pallas_src>

<mosaic_0001>
module attributes {stable_mosaic.version = 11 : i64} {
  func.func @_fused_kernel(%arg0: i32, %arg1: memref<1x128x256xf32, #tpu.memory_space<vmem>>, %arg2: memref<128x8xf32, #tpu.memory_space<vmem>>, %arg3: memref<8x128xf32, #tpu.memory_space<vmem>>, %arg4: memref<1x128x256xf32, #tpu.memory_space<vmem>>) attributes {dimension_semantics = [#tpu.dimension_semantics<parallel>], iteration_bounds = array<i64: 2>, scalar_prefetch = 0 : i64, scratch_operands = 0 : i64, tpu.core_type = #tpu.core_type<tc>, window_params = [{transform_indices = @transform_0, window_bounds = array<i64: 1, 128, 256>}, {pipeline_mode = #tpu.pipeline_mode<synchronous>, transform_indices = @transform_1, window_bounds = array<i64: 128, 8>}, {pipeline_mode = #tpu.pipeline_mode<synchronous>, transform_indices = @transform_2, window_bounds = array<i64: 8, 128>}, {transform_indices = @transform_3, window_bounds = array<i64: 1, 128, 256>}]} {
    %cst = arith.constant 0.000000e+00 : f32
    %0 = vector.broadcast %cst : f32 to vector<1x128xf32>
    %cst_0 = arith.constant 0xFF800000 : f32
    %1 = vector.broadcast %cst_0 : f32 to vector<1x128xf32>
    %c0_i32 = arith.constant 0 : i32
    %c2_i32 = arith.constant 2 : i32
    %2 = arith.addi %c0_i32, %c2_i32 : i32
    %c1_i32 = arith.constant 1 : i32
    %3:2 = scf.for %arg5 = %c0_i32 to %2 step %c1_i32 iter_args(%arg6 = %0, %arg7 = %1) -> (vector<1x128xf32>, vector<1x128xf32>)  : i32 {
      %c128_i32 = arith.constant 128 : i32
      %27 = arith.muli %arg5, %c128_i32 : i32
      %28 = tpu.assume_multiple %27, 128 : i32
      %c0_19 = arith.constant 0 : index
      %c0_20 = arith.constant 0 : index
      %29 = arith.index_cast %28 : i32 to index
      %30 = vector.load %arg1[%c0_19, %c0_20, %29] : memref<1x128x256xf32, #tpu.memory_space<vmem>>, vector<1x128x128xf32>
      %cst_21 = arith.constant dense<0.000000e+00> : vector<1x128xf32>
      %31 = vector.multi_reduction <add>, %30, %cst_21 [2] : vector<1x128x128xf32> to vector<1x128xf32>
      %32 = arith.addf %arg6, %31 : vector<1x128xf32>
      %cst_22 = arith.constant dense<0xFF800000> : vector<1x128xf32>
      %33 = vector.multi_reduction <maximumf>, %30, %cst_22 [2] : vector<1x128x128xf32> to vector<1x128xf32>
      %34 = arith.maximumf %arg7, %33 : vector<1x128xf32>
      scf.yield %32, %34 : vector<1x128xf32>, vector<1x128xf32>
    }
    %c2_i32_1 = arith.constant 2 : i32
    %cst_2 = arith.constant 3.906250e-03 : f32
    %4 = vector.broadcast %cst_2 : f32 to vector<1x128xf32>
    %5 = arith.mulf %3#0, %4 : vector<1x128xf32>
    %c0 = arith.constant 0 : index
    %c0_3 = arith.constant 0 : index
    %6 = vector.load %arg2[%c0, %c0_3] : memref<128x8xf32, #tpu.memory_space<vmem>>, vector<128x8xf32>
    %c0_4 = arith.constant 0 : index
    %c0_5 = arith.constant 0 : index
    %7 = vector.load %arg3[%c0_4, %c0_5] : memref<8x128xf32, #tpu.memory_space<vmem>>, vector<8x128xf32>
    %cst_6 = arith.constant dense<0.000000e+00> : vector<1x8xf32>
    %8 = tpu.matmul %5, %6, %cst_6 {dimension_numbers = #tpu.dot_dimension_numbers<[1], [0], [0], [1], [0, 0, 1, 1], [], []>} : vector<1x128xf32>, vector<128x8xf32>, vector<1x8xf32> -> vector<1x8xf32>
    %cst_7 = arith.constant 0.000000e+00 : f32
    %9 = vector.broadcast %cst_7 : f32 to vector<1x8xf32>
    %10 = arith.maximumf %8, %9 : vector<1x8xf32>
    %cst_8 = arith.constant dense<0.000000e+00> : vector<1x128xf32>
    %11 = tpu.matmul %10, %7, %cst_8 {dimension_numbers = #tpu.dot_dimension_numbers<[1], [0], [0], [1], [0, 0, 1, 1], [], []>} : vector<1x8xf32>, vector<8x128xf32>, vector<1x128xf32> -> vector<1x128xf32>
    %cst_9 = arith.constant dense<0.000000e+00> : vector<1x8xf32>
    %12 = tpu.matmul %3#1, %6, %cst_9 {dimension_numbers = #tpu.dot_dimension_numbers<[1], [0], [0], [1], [0, 0, 1, 1], [], []>} : vector<1x128xf32>, vector<128x8xf32>, vector<1x8xf32> -> vector<1x8xf32>
    %cst_10 = arith.constant 0.000000e+00 : f32
    %13 = vector.broadcast %cst_10 : f32 to vector<1x8xf32>
    %14 = arith.maximumf %12, %13 : vector<1x8xf32>
    %cst_11 = arith.constant dense<0.000000e+00> : vector<1x128xf32>
    %15 = tpu.matmul %14, %7, %cst_11 {dimension_numbers = #tpu.dot_dimension_numbers<[1], [0], [0], [1], [0, 0, 1, 1], [], []>} : vector<1x8xf32>, vector<8x128xf32>, vector<1x128xf32> -> vector<1x128xf32>
    %16 = arith.addf %11, %15 : vector<1x128xf32>
    %17 = arith.negf %16 : vector<1x128xf32>
    %18 = math.exp %17 : vector<1x128xf32>
    %cst_12 = arith.constant 1.000000e+00 : f32
    %19 = vector.broadcast %cst_12 : f32 to vector<1x128xf32>
    %20 = arith.addf %19, %18 : vector<1x128xf32>
    %21 = arith.divf %19, %20 : vector<1x128xf32>
    %22 = vector.shape_cast %21 : vector<1x128xf32> to vector<1x128x1xf32>
    %c0_13 = arith.constant 0 : index
    %c0_14 = arith.constant 0 : index
    %c0_15 = arith.constant 0 : index
    %23 = vector.load %arg1[%c0_13, %c0_14, %c0_15] : memref<1x128x256xf32, #tpu.memory_space<vmem>>, vector<1x128x256xf32>
    %24 = vector.broadcast %22 : vector<1x128x1xf32> to vector<1x128x256xf32>
    %25 = arith.mulf %23, %24 : vector<1x128x256xf32>
    %c0_16 = arith.constant 0 : index
    %c0_17 = arith.constant 0 : index
    %c0_18 = arith.constant 0 : index
    %26 = vector.load %arg4[%c0_16, %c0_17, %c0_18] : memref<1x128x256xf32, #tpu.memory_space<vmem>>, vector<1x128x256xf32>
    tpu.vector_store %arg4[%c0_16, %c0_17, %c0_18], %25 {strides = array<i32>} : memref<1x128x256xf32, #tpu.memory_space<vmem>>, vector<1x128x256xf32>,
    return
  }
  func.func @transform_0(%arg0: i32) -> (i32, i32, i32) {
    %c0_i32 = arith.constant 0 : i32
    %c0_i32_0 = arith.constant 0 : i32
    %c0_i32_1 = arith.constant 0 : i32
    return %arg0, %c0_i32, %c0_i32_0 : i32, i32, i32
  }
  func.func @transform_1(%arg0: i32) -> (i32, i32) {
    %c0_i32 = arith.constant 0 : i32
    %c0_i32_0 = arith.constant 0 : i32
    %c0_i32_1 = arith.constant 0 : i32
    return %c0_i32, %c0_i32_0 : i32, i32
  }
  func.func @transform_2(%arg0: i32) -> (i32, i32) {
    %c0_i32 = arith.constant 0 : i32
    %c0_i32_0 = arith.constant 0 : i32
    %c0_i32_1 = arith.constant 0 : i32
    return %c0_i32, %c0_i32_0 : i32, i32
  }
  func.func @transform_3(%arg0: i32) -> (i32, i32, i32) {
    %c0_i32 = arith.constant 0 : i32
    %c0_i32_0 = arith.constant 0 : i32
    %c0_i32_1 = arith.constant 0 : i32
    return %arg0, %c0_i32, %c0_i32_0 : i32, i32, i32
  }
}

</mosaic_0001>

<bundles_post_ra>
// kernel: tpu_custom_call.1
= control target key start
LH: loop header
LB: loop body
LE: loop exit
PB: predicated region body
PF: predicated region fallthrough
CT: control target
= control target key end

     0   :  { %8 = vsyncpa [#allocation3], 0  ;;  %s3043_s0 = inlined_call_operand.hbm [shape: f32[2,128,256], index: 0, kind: input, shape index: {}]   ;;  %s3044_s1 = inlined_call_operand.vmem [shape: f32[128,8], index: 1, kind: input, shape index: {}]   ;;  %s3045_s2 = inlined_call_operand.vmem [shape: f32[8,128], index: 2, kind: input, shape index: {}]   ;;  %s3046_s3 = inlined_call_operand.hbm [shape: f32[2,128,256], index: 3, kind: output, shape index: {}]  }
   0x1   :  { %10 = vsyncpa [#allocation3 + $0x1], 0 }
   0x2   :  { %11 = vsyncpa [#allocation4], 0 }
   0x3   :  { %13 = vsyncpa [#allocation4 + $0x1], 0  ;;  %s2149_s12 = smov 0   ;;  %s2151_s13 = smov 0  }
   0x4   :  { %s2153_s14 = smov 0   ;;  %s2155_s15 = smov 0  }
   0x5 LB: > { %s2170_s16 = sadd.s32 4294967295, %s1986_s15   ;;  %s1249_s17 = sadd.s32 4294967294, %s1986_s15   ;;  %s1986_s15 = sphi %s2155_s15, %s3141_s15   ;;  %s1982_s14 = sphi %s2153_s14, %s3140_s14   ;;  %s1978_s13 = sphi %s2151_s13, %s3139_s13   ;;  %s1974_s12 = sphi %s2149_s12, %s3138_s12  }
   0x6   : > { %s2174_s18 = sadd.s32 1, %s1986_s15   ;;  %s26_s19 = sadd.s32 1, %s1982_s14 }
   0x7   : > { %s23_s20 = ssub.s32 %s1986_s15, %s2174_s18  ;;  %p33_p0 = scmp.ne.s32.totalorder %s1982_s14, %s1978_s13 }
   0x8   : > { %p24_p1 = scmp.eq.s32.totalorder %s23_s20, 0  ;;  %p34_p2 = scmp.eq.s32.totalorder %s1986_s15, 0 }
   0x9   : > { %p39_p3 = scmp.ne.s32.totalorder %s1978_s13, %s1974_s12  ;;  %p40_p4 = scmp.eq.s32.totalorder %s2170_s16, 0 }
   0xa   : > { %s2186_s21 = scalar_select %p24_p1, %s1982_s14, %s26_s19  }
   0xb   : > { %p2188_p5 = por %p34_p2, %p33_p0  ;;  %p2192_p6 = por %p40_p4, %p39_p3 }
   0xc   : > { %p105_p7 = scmp.eq.s32.totalorder %s2170_s16, 1  ;;  %p111_p8 = scmp.eq.s32.totalorder %s1249_s17, 1 }
   0xd   : > { %p1449_p10 = scmp.lt.s32.totalorder %s1986_s15, 2  ;;  %s137_s26 = sand.u32 1, %s1982_s14  }
   0xe   : > { %p2199_p11 = por %p105_p7, %p33_p0  ;;  %p2203_p12 = por %p111_p8, %p39_p3 }
   0xf   : > { %s1268_s27 = sshll.u32 %s1986_s15, 12  ;;  %s1252_s28 = sshll.u32 %s137_s26, 8 }
  0x10   : > { %s3054_s24 = scalar_select %p2199_p11, 1, 0 }
  0x11   : > { %s3055_s25 = scalar_select %p2203_p12, 1, 0 }
  0x12   : > { %s2212_s4 = scalar_lea.hbm %s3043_s0, %s1268_s27  ;;  %s141_s5 = scalar_lea.vmem [#allocation2], %s1252_s28 }
  0x13   : > { %s148_s6 = sshll.u32 %s141_s5, 4  ;;  %p2216_p13 = pnand %p1449_p10, %p2188_p5  ;;  %s2220_s6 = int_to_ptr.vmem [resolvable:$true] %s148_s6 }
  0x14   : > { %s2222_s8 = scalar_lea.sflag [#allocation3], %s137_s26  ;;  %s1758_s9 = scalar_lea.hbm %s2212_s4, 4096 }
  0x15   : > { %p1759_p0 = scmp.ne.s32.totalorder %s2212_s4, %s1758_s9  ;;  %p1760_p1 = pneg %p2216_p13 }
  0x16   : > { %s1763_s17 = scalar_lea.hbm %s3043_s0, 8192  ;;  %p1764_p4 = scmp.lt.u32.totalorder %s2212_s4, %s3043_s0 }
  0x17   : > { %p1761_p2 = pnand %p1760_p1, %p1759_p0  ;;  %p1765_p5 = scmp.lt.u32.totalorder %s1763_s17, %s1758_s9 }
  0x18   : > { %p1767_p8 = scmp.lt.u32.totalorder %s1758_s9, %s2212_s4 }
  0x19   : > { %p1762_p3 = pneg %p1761_p2  ;;  %p1766_p7 = por %p1765_p5, %p1764_p4 }
  0x1b   : > { %p1768_p10 = por %p1767_p8, %p1766_p7 }
  0x1d   : > { %p1769_p9 = pnand %p1768_p10, %p1762_p3 }
  0x1f   : > { %1772 = shalt.err (!%p1769_p9)
}
  0x20   : > { %s1773_s22 = scalar_lea.vmem %s2220_s6, 4096  ;;  %s2120_s26 = smov [#allocation2]  }
  0x21   : > { %p1774_p0 = scmp.ne.s32.totalorder %s2220_s6, %s1773_s22  ;;  %s1778_s27 = sshll.u32 %s2120_s26, 4  ;;  %s1779_s27 = int_to_ptr.vmem [resolvable:$false] %s1778_s27 }
  0x22   : > { %s1780_s28 = scalar_lea.vmem %s1779_s27, 8192  ;;  %p1781_p11 = scmp.lt.s32.totalorder %s2220_s6, %s1779_s27 }
  0x23   : > { %p1776_p2 = pnand %p1774_p0, %p1760_p1  ;;  %p1782_p4 = scmp.lt.s32.totalorder %s1780_s28, %s1773_s22 }
  0x25   : > { %p1777_p12 = pneg %p1776_p2  ;;  %p1783_p5 = por %p1782_p4, %p1781_p11 }
  0x27   : > { %p1784_p7 = pnand %p1783_p5, %p1777_p12 }
  0x29   : > { %1787 = shalt.err (!%p1784_p7)
}
  0x2a   : > { %s2121_s29 = smov 256   ;;  %s2122_s30 = smov 16  }
  0x2b   : > { %1444 = dma.hbm_to_vmem [thread:$0]  (!%p2216_p13), %s2212_s4, 4096, %s2220_s6, %s2222_s8, %s2121_s29, %s2121_s29, %s2122_s30  }
  0x2c   : > { %p1255_p9 = scmp.ge.s32.totalorder %s1986_s15, 1  ;;  %p156_p1 = scmp.lt.s32.totalorder %s1986_s15, 3 }
  0x2e   : > { %p157_p3 = pnand %p1255_p9, %p156_p1 }
  0x30   : > { %160 = sbr.rel (%p157_p3) target bundleno = 934 (0x3a6), region = 32 }
  0x37   : > { %s2253_s5 = sand.u32 1, %s1978_s13  }
  0x38   : > { %s1256_s9 = sshll.u32 %s2253_s5, 8  ;;  %s163_s10 = scalar_lea.sflag [#allocation3], %s2253_s5 }
  0x39   : > { %s2257_s11 = scalar_lea.vmem [#allocation2], %s1256_s9 }
  0x3a   : > { %1965 = dma.done.wait (%p2192_p6), %s163_s10, 4096  }
  0x3b   : > { %1967 = vsyncadd (%p2192_p6), %s163_s10, 4294963200  ;;  %s2263_s4 = scalar_lea.vmem [#allocation5], %s1256_s9  ;;  %v2265_v0 = vmov -inf   ;;  %v2267_v1 = vmov -inf   ;;  %v2269_v2 = vmov -inf   ;;  %v2271_v3 = vmov -inf  }
  0x3c   : > { %v2273_v4 = vmov -inf   ;;  %v2275_v5 = vmov -inf   ;;  %v2277_v6 = vmov -inf   ;;  %v2279_v7 = vmov -inf   ;;  %s2329_s23 = smov 0  }
  0x3d   : > { %v2281_v8 = vmov -inf   ;;  %v2283_v9 = vmov -inf   ;;  %v2285_v10 = vmov -inf   ;;  %v2287_v11 = vmov -inf  }
  0x3e   : > { %v2289_v12 = vmov -inf   ;;  %v2291_v13 = vmov -inf   ;;  %v2293_v14 = vmov -inf   ;;  %v2295_v15 = vmov -inf  }
  0x3f   : > { %v2297_v16 = vmov 0.0   ;;  %v2299_v17 = vmov 0.0   ;;  %v2301_v18 = vmov 0.0   ;;  %v2303_v19 = vmov 0.0  }
  0x40   : > { %v2305_v20 = vmov 0.0   ;;  %v2307_v21 = vmov 0.0   ;;  %v2309_v22 = vmov 0.0   ;;  %v2311_v23 = vmov 0.0  }
  0x41   : > { %v2313_v24 = vmov 0.0   ;;  %v2315_v25 = vmov 0.0   ;;  %v2317_v26 = vmov 0.0   ;;  %v2319_v27 = vmov 0.0  }
  0x42   : > { %v2321_v28 = vmov 0.0   ;;  %v2323_v29 = vmov 0.0   ;;  %v2325_v30 = vmov 0.0   ;;  %v2327_v31 = vmov 0.0  }
  0x43 LB: >> { %s1258_s6 = sshll.u32 %s2118_s23, 7  ;;  %s194_s19 = sadd.s32 1, %s2118_s23   ;;  %s2118_s23 = sphi %s2329_s23, %s3130_s23   ;;  %v2114_v31 = vphi %v2327_v31, %v3129_v31   ;;  %v2110_v30 = vphi %v2325_v30, %v3128_v30   ;;  %v2106_v29 = vphi %v2323_v29, %v3127_v29   ;;  %v2102_v28 = vphi %v2321_v28, %v3126_v28   ;;  %v2098_v27 = vphi %v2319_v27, %v3125_v27   ;;  %v2094_v26 = vphi %v2317_v26, %v3124_v26   ;;  %v2090_v25 = vphi %v2315_v25, %v3123_v25   ;;  %v2086_v24 = vphi %v2313_v24, %v3122_v24   ;;  %v2082_v23 = vphi %v2311_v23, %v3121_v23   ;;  %v2078_v22 = vphi %v2309_v22, %v3120_v22   ;;  %v2074_v21 = vphi %v2307_v21, %v3119_v21   ;;  %v2070_v20 = vphi %v2305_v20, %v3118_v20   ;;  %v2066_v19 = vphi %v2303_v19, %v3117_v19   ;;  %v2062_v18 = vphi %v2301_v18, %v3116_v18   ;;  %v2058_v17 = vphi %v2299_v17, %v3115_v17   ;;  %v2054_v16 = vphi %v2297_v16, %v3114_v16   ;;  %v2050_v15 = vphi %v2295_v15, %v3113_v15   ;;  %v2046_v14 = vphi %v2293_v14, %v3112_v14   ;;  %v2042_v13 = vphi %v2291_v13, %v3111_v13   ;;  %v2038_v12 = vphi %v2289_v12, %v3110_v12   ;;  %v2034_v11 = vphi %v2287_v11, %v3109_v11   ;;  %v2030_v10 = vphi %v2285_v10, %v3108_v10   ;;  %v2026_v9 = vphi %v2283_v9, %v3107_v9   ;;  %v2022_v8 = vphi %v2281_v8, %v3106_v8   ;;  %v2018_v7 = vphi %v2279_v7, %v3105_v7   ;;  %v2014_v6 = vphi %v2277_v6, %v3104_v6   ;;  %v2010_v5 = vphi %v2275_v5, %v3103_v5   ;;  %v2006_v4 = vphi %v2273_v4, %v3102_v4   ;;  %v2002_v3 = vphi %v2271_v3, %v3101_v3   ;;  %v1998_v2 = vphi %v2269_v2, %v3099_v2   ;;  %v1994_v1 = vphi %v2267_v1, %v3097_v1   ;;  %v1990_v0 = vphi %v2265_v0, %v3095_v0  }
  0x44   : >> { %s228_s7 = sshra.s32 %s1258_s6, 7  ;;  %p2522_p6 = scmp.ge.s32.totalorder %s194_s19, 2  }
  0x45   : >> { %s1259_s8 = sshll.u32 %s228_s7, 3  ;;  %s3130_s23 = smov %s194_s19  ;;  %vm2124_vm0 = vmmov (%p2522_p6), 0   ;;  %vm404_vm1 = vcmask (%p2522_p6), 130112   ;;  %vm411_vm2 = vcmask (%p2522_p6), 195712   ;;  %vm418_vm3 = vcmask (%p2522_p6), 261312  }
  0x46   : >> { %s231_s17 = scalar_lea.vmem %s2257_s11, %s1259_s8 [#allocation2]  ;;  %vm425_vm4 = vcmask (%p2522_p6), 326912   ;;  %vm432_vm5 = vcmask (%p2522_p6), 392512   ;;  %vm439_vm6 = vcmask (%p2522_p6), 458112   ;;  %vm446_vm7 = vcmask (%p2522_p6), 523712   ;;  %s1269_s29 = sshll.u32 (%p2522_p6), %s2170_s16, 12 }
  0x47   : >> { %v234_v32 = vld [vmem:[%s231_s17 + $0x20] sm:$0xff]  ;;  %v235_v34 = vld [vmem:[%s231_s17 + $0x30] sm:$0xff]  ;;  %vm453_vm8 = vcmask (%p2522_p6), 589312   ;;  %vm460_vm9 = vcmask (%p2522_p6), 654912   ;;  %vm467_vm10 = vcmask (%p2522_p6), 720512   ;;  %vm474_vm11 = vcmask (%p2522_p6), 786112   ;;  %s2993_s16 = scalar_lea.hbm (%p2522_p6), %s3046_s3, %s1269_s29 }
  0x48   : >> { %v232_v33 = vld [vmem:[%s231_s17] sm:$0xff]  ;;  %252 = vadd.xlane.f32.xlu1 %v234_v32  ;;  %v233_v35 = vld [vmem:[%s231_s17 + $0x10] sm:$0xff]  ;;  %vm481_vm12 = vcmask (%p2522_p6), 851712   ;;  %vm488_vm13 = vcmask (%p2522_p6), 917312   ;;  %vm495_vm14 = vcmask (%p2522_p6), 982912   ;;  %vm502_vm15 = vcmask (%p2522_p6), 1048512  }
  0x49   : >> { %248 = vadd.xlane.f32.xlu0 %v232_v33  ;;  %v237_v36 = vld [vmem:[%s231_s17 + $0x50] sm:$0xff]  ;;  %v236_v37 = vld [vmem:[%s231_s17 + $0x40] sm:$0xff]  ;;  %s1073_s30 = sshll.u32 (%p2522_p6), %s2263_s4, 4  ;;  %p3135_p12 = scmp.ne.s32.totalorder (%p2522_p6), %s3054_s24, 0  ;;  %s2995_s30 = int_to_ptr.vmem [resolvable:$true] %s1073_s30 }
  0x4a   : >> { %v239_v38 = vld [vmem:[%s231_s17 + $0x70] sm:$0xff]  ;;  %v238_v39 = vld [vmem:[%s231_s17 + $0x60] sm:$0xff]  ;;  %s1788_s23 = scalar_lea.vmem (%p2522_p6), %s2995_s30, 4096  ;;  %s2126_s6 = smov (%p2522_p6), [#allocation5]  }
  0x4b   : >> { %v241_v40 = vld [vmem:[%s231_s17 + $0x90] sm:$0xff]  ;;  %v240_v41 = vld [vmem:[%s231_s17 + $0x80] sm:$0xff]  ;;  %p1789_p11 = scmp.ne.s32.totalorder (%p2522_p6), %s2995_s30, %s1788_s23  ;;  %s1792_s7 = sshll.u32 (%p2522_p6), %s2126_s6, 4  ;;  %s1793_s7 = int_to_ptr.vmem [resolvable:$false] %s1792_s7 }
  0x4c   : >> { %254 = vadd.xlane.f32.xlu1 %v235_v34  ;;  %v243_v42 = vld [vmem:[%s231_s17 + $0xb0] sm:$0xff]  ;;  %v242_v43 = vld [vmem:[%s231_s17 + $0xa0] sm:$0xff]  ;;  %s1794_s8 = scalar_lea.vmem (%p2522_p6), %s1793_s7, 8192  ;;  %p1795_p10 = scmp.lt.s32.totalorder (%p2522_p6), %s2995_s30, %s1793_s7 }
  0x4d   : >> { %250 = vadd.xlane.f32.xlu0 %v233_v35  ;;  %v245_v44 = vld [vmem:[%s231_s17 + $0xd0] sm:$0xff]  ;;  %v244_v45 = vld [vmem:[%s231_s17 + $0xc0] sm:$0xff]  ;;  %p1790_p13 = pnand (%p2522_p6), %p1789_p11, %p3135_p12  ;;  %p1796_p0 = scmp.lt.s32.totalorder (%p2522_p6), %s1794_s8, %s1788_s23 }
  0x4e   : >> { %v247_v46 = vld [vmem:[%s231_s17 + $0xf0] sm:$0xff]  ;;  %v246_v47 = vld [vmem:[%s231_s17 + $0xe0] sm:$0xff] }
  0x4f   : > { %p1791_p8 = pneg (%p2522_p6), %p1790_p13  ;;  %p1797_p2 = por (%p2522_p6), %p1796_p0, %p1795_p10 }
  0x50   : >> { %258 = vadd.xlane.f32.xlu1 %v237_v36 }
  0x51   : >> { %256 = vadd.xlane.f32.xlu0 %v236_v37  ;;  %p1798_p4 = pnand (%p2522_p6), %p1797_p2, %p1791_p8 }
  0x54   : >> { %262 = vadd.xlane.f32.xlu1 %v239_v38 }
  0x55   : >> { %260 = vadd.xlane.f32.xlu0 %v238_v39 }
  0x58   : >> { %266 = vadd.xlane.f32.xlu1 %v241_v40 }
  0x59   : >> { %264 = vadd.xlane.f32.xlu0 %v240_v41 }
  0x5c   : >> { %270 = vadd.xlane.f32.xlu1 %v243_v42 }
  0x5d   : >> { %268 = vadd.xlane.f32.xlu0 %v242_v43 }
  0x60   : >> { %274 = vadd.xlane.f32.xlu1 %v245_v44 }
  0x61   : >> { %272 = vadd.xlane.f32.xlu0 %v244_v45 }
  0x64   : >> { %278 = vadd.xlane.f32.xlu1 %v247_v46 }
  0x65   : >> { %276 = vadd.xlane.f32.xlu0 %v246_v47 }
  0x68   : >> { %298 = vmax.xlane.f32.xlu1 %v233_v35 }
  0x69   : >> { %296 = vmax.xlane.f32.xlu0 %v232_v33 }
  0x6c   : >> { %302 = vmax.xlane.f32.xlu1 %v235_v34 }
  0x6d   : >> { %300 = vmax.xlane.f32.xlu0 %v234_v32 }
  0x70   : >> { %306 = vmax.xlane.f32.xlu1 %v237_v36 }
  0x71   : >> { %304 = vmax.xlane.f32.xlu0 %v236_v37 }
  0x74   : >> { %310 = vmax.xlane.f32.xlu1 %v239_v38 }
  0x75   : >> { %308 = vmax.xlane.f32.xlu0 %v238_v39 }
  0x78   : >> { %314 = vmax.xlane.f32.xlu1 %v241_v40 }
  0x79   : >> { %312 = vmax.xlane.f32.xlu0 %v240_v41 }
  0x7c   : >> { %318 = vmax.xlane.f32.xlu1 %v243_v42 }
  0x7d   : >> { %316 = vmax.xlane.f32.xlu0 %v242_v43 }
  0x80   : >> { %322 = vmax.xlane.f32.xlu1 %v245_v44 }
  0x81   : >> { %320 = vmax.xlane.f32.xlu0 %v244_v45 }
  0x84   : >> { %326 = vmax.xlane.f32.xlu1 %v247_v46 }
  0x85   : >> { %324 = vmax.xlane.f32.xlu0 %v246_v47 }
  0xd5   : >> { %v253_v48 = vpop.xlane.xlu1 %252 }
  0xd6   : >> { %v249_v49 = vpop.xlane.xlu0 %248  ;;  %v2426_v29 = vadd.f32 %v2106_v29, %v253_v48  }
  0xd7   : >> { %v2428_v31 = vadd.f32 %v2114_v31, %v249_v49  }
  0xd8   : >> { %v3057_v50 = vmov %v2426_v29 }
  0xd9   : >> { %v3058_v51 = vmov %v2428_v31  ;;  %v255_v52 = vpop.xlane.xlu1 %254 }
  0xda   : >> { %v251_v53 = vpop.xlane.xlu0 %250  ;;  %v2431_v28 = vadd.f32 %v2102_v28, %v255_v52   ;;  %v3129_v31 = vmov %v3058_v51 }
  0xdb   : >> { %v2433_v30 = vadd.f32 %v2110_v30, %v251_v53   ;;  %v360_v31 = vld [vmem:[%s3044_s1] sm:$0xff] (%p2522_p6) }
  0xdc   : >> { %v3059_v54 = vmov %v2431_v28 }
  0xdd   : >> { %v3060_v55 = vmov %v2433_v30  ;;  %v259_v56 = vpop.xlane.xlu1 %258 }
  0xde   : >> { %v257_v57 = vpop.xlane.xlu0 %256  ;;  %v2436_v26 = vadd.f32 %v2094_v26, %v259_v56  }
  0xdf   : >> { %v2439_v27 = vadd.f32 %v2098_v27, %v257_v57  }
  0xe0   : >> { %v3061_v58 = vmov %v2436_v26 }
  0xe1   : >> { %v3062_v59 = vmov %v2439_v27  ;;  %v263_v60 = vpop.xlane.xlu1 %262 }
  0xe2   : >> { %v261_v61 = vpop.xlane.xlu0 %260  ;;  %v2442_v24 = vadd.f32 %v2086_v24, %v263_v60  }
  0xe3   : >> { %v2445_v25 = vadd.f32 %v2090_v25, %v261_v61  }
  0xe4   : >> { %v3063_v62 = vmov %v2442_v24 }
  0xe5   : >> { %v3064_v63 = vmov %v2445_v25  ;;  %v267_v29 = vpop.xlane.xlu1 %266 }
  0xe6   : >> { %v265_v28 = vpop.xlane.xlu0 %264  ;;  %v2448_v22 = vadd.f32 %v2078_v22, %v267_v29   ;;  %v3127_v29 = vmov %v3057_v50 }
  0xe7   : >> { %v2451_v23 = vadd.f32 %v2082_v23, %v265_v28   ;;  %v3126_v28 = vmov %v3059_v54  ;;  %v366_v29 = vld [vmem:[%s3044_s1 + $0x30] sm:$0xff] (%p2522_p6) }
  0xe8   : >> { %v3065_v32 = vmov %v2448_v22  ;;  %v367_v28 = vld [vmem:[%s3044_s1 + $0x38] sm:$0xff] (%p2522_p6) }
  0xe9   : >> { %v3066_v33 = vmov %v2451_v23  ;;  %v271_v26 = vpop.xlane.xlu1 %270 }
  0xea   : >> { %v269_v30 = vpop.xlane.xlu0 %268  ;;  %v2454_v20 = vadd.f32 %v2070_v20, %v271_v26   ;;  %v3124_v26 = vmov %v3061_v58 }
  0xeb   : >> { %v2457_v21 = vadd.f32 %v2074_v21, %v269_v30   ;;  %v3128_v30 = vmov %v3060_v55  ;;  %v368_v26 = vld [vmem:[%s3044_s1 + $0x40] sm:$0xff] (%p2522_p6) }
  0xec   : >> { %v3067_v34 = vmov %v2454_v20  ;;  %v2125_v30 = vmov (%p2522_p6), 0.0  }
  0xed   : >> { %v3068_v35 = vmov %v2457_v21  ;;  %v275_v24 = vpop.xlane.xlu1 %274  ;;  %1340 = vmatprep.mubr.msk.f32.mxu0 (%p2522_p6), %vm2124_vm0, %v2125_v30  ;;  %1375 = vmatprep.mubr.msk.f32.mxu1 (%p2522_p6), %vm2124_vm0, %v2125_v30 }
  0xee   : >> { %v273_v27 = vpop.xlane.xlu0 %272  ;;  %v2460_v18 = vadd.f32 %v2062_v18, %v275_v24   ;;  %v3122_v24 = vmov %v3063_v62 }
  0xef   : >> { %v2463_v19 = vadd.f32 %v2066_v19, %v273_v27   ;;  %v3125_v27 = vmov %v3062_v59  ;;  %v2668_v24 = vmul.f32 (%p2522_p6), 0.00390625, %v3057_v50  ;;  %v2685_v50 = vmul.f32 (%p2522_p6), 0.00390625, %v3062_v59 }
  0xf0   : >> { %v3069_v36 = vmov %v2460_v18  ;;  %v2670_v27 = vpack.c.bf16 (%p2522_p6), %v367_v28, %v366_v29  ;;  %v2706_v59 = vmul.f32 (%p2522_p6), 0.00390625, %v3064_v63 }
  0xf1   : >> { %v3070_v37 = vmov %v2463_v19  ;;  %v279_v22 = vpop.xlane.xlu1 %278 }
  0xf2   : >> { %v277_v25 = vpop.xlane.xlu0 %276  ;;  %v2466_v16 = vadd.f32 %v2054_v16, %v279_v22   ;;  %v3120_v22 = vmov %v3065_v32 }
  0xf3   : >> { %v2469_v17 = vadd.f32 %v2058_v17, %v277_v25   ;;  %v3123_v25 = vmov %v3064_v63  ;;  %v369_v22 = vld [vmem:[%s3044_s1 + $0x48] sm:$0xff] (%p2522_p6) }
  0xf4   : >> { %v3071_v38 = vmov %v2466_v16  ;;  %v370_v25 = vld [vmem:[%s3044_s1 + $0x50] sm:$0xff] (%p2522_p6) }
  0xf5   : >> { %v3072_v39 = vmov %v2469_v17  ;;  %v299_v20 = vpop.xlane.xlu1 %298 }
  0xf6   : >> { %v297_v23 = vpop.xlane.xlu0 %296  ;;  %v2472_v14 = vmax.f32 %v2046_v14, %v299_v20   ;;  %v3118_v20 = vmov %v3067_v34 }
  0xf7   : >> { %v2475_v15 = vmax.f32 %v2050_v15, %v297_v23   ;;  %v3121_v23 = vmov %v3066_v33  ;;  %v2682_v20 = vmul.f32 (%p2522_p6), 0.00390625, %v3059_v54  ;;  %v373_v54 = vld [vmem:[%s3044_s1 + $0x68] sm:$0xff] (%p2522_p6) }
  0xf8   : >> { %v3073_v40 = vmov %v2472_v14  ;;  %v2688_v23 = vmul.f32 (%p2522_p6), 0.00390625, %v3061_v58  ;;  %v374_v58 = vld [vmem:[%s3044_s1 + $0x70] sm:$0xff] (%p2522_p6) }
  0xf9   : >> { %v3074_v41 = vmov %v2475_v15  ;;  %v303_v18 = vpop.xlane.xlu1 %302 }
  0xfa   : >> { %v301_v21 = vpop.xlane.xlu0 %300  ;;  %v2478_v12 = vmax.f32 %v2038_v12, %v303_v18   ;;  %v3116_v18 = vmov %v3069_v36 }
  0xfb   : >> { %v2481_v13 = vmax.f32 %v2042_v13, %v301_v21   ;;  %v3119_v21 = vmov %v3068_v35  ;;  %v2692_v18 = vpack.c.bf16 (%p2522_p6), %v369_v22, %v368_v26 }
  0xfc   : >> { %v3075_v42 = vmov %v2478_v12 }
  0xfd   : >> { %v3076_v43 = vmov %v2481_v13  ;;  %v307_v16 = vpop.xlane.xlu1 %306 }
  0xfe   : >> { %v305_v19 = vpop.xlane.xlu0 %304  ;;  %v2484_v10 = vmax.f32 %v2030_v10, %v307_v16   ;;  %v3114_v16 = vmov %v3071_v38 }
  0xff   : >> { %v2487_v11 = vmax.f32 %v2034_v11, %v305_v19   ;;  %v3117_v19 = vmov %v3070_v37  ;;  %v372_v16 = vld [vmem:[%s3044_s1 + $0x60] sm:$0xff] (%p2522_p6) }
 0x100   : >> { %v3077_v44 = vmov %v2484_v10  ;;  %v2709_v19 = vmul.f32 (%p2522_p6), 0.00390625, %v3063_v62  ;;  %v2728_v62 = vmul.f32 (%p2522_p6), 0.00390625, %v3067_v34 }
 0x101   : >> { %v3078_v45 = vmov %v2487_v11  ;;  %v311_v14 = vpop.xlane.xlu1 %310 }
 0x102   : >> { %v309_v17 = vpop.xlane.xlu0 %308  ;;  %v2490_v8 = vmax.f32 %v2022_v8, %v311_v14   ;;  %v3112_v14 = vmov %v3073_v40 }
 0x103   : >> { %v2493_v9 = vmax.f32 %v2026_v9, %v309_v17   ;;  %v3115_v17 = vmov %v3072_v39  ;;  %v2711_v14 = vpack.c.bf16 (%p2522_p6), %v373_v54, %v372_v16 }
 0x104   : >> { %v3079_v46 = vmov %v2490_v8  ;;  %v375_v17 = vld [vmem:[%s3044_s1 + $0x78] sm:$0xff] (%p2522_p6) }
 0x105   : >> { %v3080_v47 = vmov %v2493_v9  ;;  %v315_v12 = vpop.xlane.xlu1 %314  ;;  %v2725_v63 = vpack.c.bf16 (%p2522_p6), %v375_v17, %v374_v58 }
 0x106   : >> { %v313_v15 = vpop.xlane.xlu0 %312  ;;  %v2496_v6 = vmax.f32 %v2014_v6, %v315_v12   ;;  %v3110_v12 = vmov %v3075_v42 }
 0x107   : >> { %v2499_v7 = vmax.f32 %v2018_v7, %v313_v15   ;;  %v3113_v15 = vmov %v3074_v41  ;;  %v2717_v12 = vmul.f32 (%p2522_p6), 0.00390625, %v3066_v33  ;;  %v2737_v33 = vmul.f32 (%p2522_p6), 0.00390625, %v3072_v39 }
 0x108   : >> { %v3081_v48 = vmov %v2496_v6  ;;  %v2720_v15 = vmul.f32 (%p2522_p6), 0.00390625, %v3065_v32  ;;  %v2740_v32 = vmul.f32 (%p2522_p6), 0.00390625, %v3071_v38 }
 0x109   : >> { %v3082_v49 = vmov %v2499_v7  ;;  %v319_v10 = vpop.xlane.xlu1 %318 }
 0x10a   : >> { %v317_v13 = vpop.xlane.xlu0 %316  ;;  %v2502_v4 = vmax.f32 %v2006_v4, %v319_v10   ;;  %v3105_v7 = vmov %v3082_v49  ;;  %v3108_v10 = vmov %v3077_v44 }
 0x10b   : >> { %v2505_v5 = vmax.f32 %v2010_v5, %v317_v13   ;;  %v3111_v13 = vmov %v3076_v43  ;;  %v2723_v10 = vmul.f32 (%p2522_p6), 0.00390625, %v3068_v35 }
 0x10c   : >> { %v3083_v52 = vmov %v2502_v4  ;;  %v2731_v13 = vmul.f32 (%p2522_p6), 0.00390625, %v3070_v37 }
 0x10d   : >> { %v3084_v53 = vmov %v2505_v5  ;;  %v323_v8 = vpop.xlane.xlu1 %322  ;;  %v3102_v4 = vmov %v3083_v52 }
 0x10e   : >> { %v321_v11 = vpop.xlane.xlu0 %320  ;;  %v2508_v2 = vmax.f32 %v1998_v2, %v323_v8   ;;  %v3103_v5 = vmov %v3084_v53  ;;  %v3106_v8 = vmov %v3079_v46  ;;  %v393_v4 = vlaneseq (%p2522_p6) }
 0x10f   : >> { %v2511_v3 = vmax.f32 %v2002_v3, %v321_v11   ;;  %v3109_v11 = vmov %v3078_v45  ;;  %v2734_v8 = vmul.f32 (%p2522_p6), 0.00390625, %v3069_v36 }
 0x110   : >> { %3085 = vst [vmem:[#allocation8_spill] sm:$0xff] %v2508_v2  ;;  %v3098_v56 = vmov %v2508_v2  ;;  %193 = sbr.rel (!%p2522_p6) target bundleno = 67 (0x43), region = 85  ;;  %v2742_v35 = vand.u32 (%p2522_p6), 127, %v393_v4  ;;  %v2744_v11 = vshrl.u32 (%p2522_p6), %v393_v4, 7 }
 0x111   : >> { %3087 = vst [vmem:[#allocation9_spill] sm:$0xff] %v2511_v3  ;;  %v327_v6 = vpop.xlane.xlu1 %326  ;;  %v3099_v2 = vmov %v3098_v56  ;;  %v3100_v57 = vmov %v2511_v3  ;;  %v2123_v56 = vmov (%p2522_p6), 0.0|0.0  }
 0x112   : >> { %v325_v9 = vpop.xlane.xlu0 %324  ;;  %v2514_v0 = vmax.f32 %v1990_v0, %v327_v6   ;;  %v3101_v3 = vmov %v3100_v57  ;;  %v3104_v6 = vmov %v3081_v48  ;;  %1388 = vmatprep.subr.bf16.mxu0 (%p2522_p6), %v2123_v56  ;;  %1412 = vmatprep.subr.bf16.mxu1 (%p2522_p6), %v2123_v56  ;;  %v365_v2 = vld [vmem:[%s3044_s1 + $0x28] sm:$0xff] (%p2522_p6)  ;;  %v2750_v34 = vsub.s32 (%p2522_p6), %v2742_v35, %v2744_v11 }
 0x113   : >> { %v2517_v1 = vmax.f32 %v1994_v1, %v325_v9   ;;  %v3107_v9 = vmov %v3080_v47  ;;  %v2649_v3 = vmul.f32 (%p2522_p6), 0.00390625, %v3058_v51  ;;  %v2665_v51 = vmul.f32 (%p2522_p6), 0.00390625, %v3060_v55  ;;  %v371_v55 = vld [vmem:[%s3044_s1 + $0x58] sm:$0xff] (%p2522_p6) }
 0x114   : >> { %3089 = vst [vmem:[#allocation10_spill] sm:$0xff] %v2514_v0  ;;  %v3094_v60 = vmov %v2514_v0  ;;  %v2694_v21 = vpack.c.bf16 (%p2522_p6), %v371_v55, %v370_v25  ;;  %v399_v36 = vadd.s32 (%p2522_p6), 4294967288, %v2742_v35  ;;  %v406_v37 = vadd.s32 (%p2522_p6), 4294967280, %v2742_v35 }
 0x115   : >> { %3091 = vst [vmem:[#allocation11_spill] sm:$0xff] %v2517_v1  ;;  %v3095_v0 = vmov %v3094_v60  ;;  %v3096_v61 = vmov %v2517_v1  ;;  %v361_v60 = vld [vmem:[%s3044_s1 + $0x8] sm:$0xff] (%p2522_p6)  ;;  %v413_v38 = vadd.s32 (%p2522_p6), 4294967272, %v2742_v35  ;;  %v420_v39 = vadd.s32 (%p2522_p6), 4294967264, %v2742_v35 }
 0x116   : >> { %v3097_v1 = vmov %v3096_v61  ;;  %v362_v61 = vld [vmem:[%s3044_s1 + $0x10] sm:$0xff] (%p2522_p6)  ;;  %v1389_v57 = vpack.c.bf16 (%p2522_p6), %v361_v60, %v360_v31  ;;  %v363_v0 = vld [vmem:[%s3044_s1 + $0x18] sm:$0xff] (%p2522_p6)  ;;  %v434_v6 = vadd.s32 (%p2522_p6), 4294967248, %v2742_v35  ;;  %v441_v9 = vadd.s32 (%p2522_p6), 4294967240, %v2742_v35 }
 0x117   : > { %v364_v1 = vld [vmem:[%s3044_s1 + $0x20] sm:$0xff]  ;;  %v1392_v5 = vpack.c.bf16 %v363_v0, %v362_v61  ;;  %v398_v60 = vrot.slane %v2649_v3, %v2750_v34  ;;  %v2762_v61 = vsub.s32 %v399_v36, %v2744_v11  ;;  %v2765_v31 = vsub.s32 %v406_v37, %v2744_v11 }
 0x118   : > { %v1395_v7 = vpack.c.bf16 %v365_v2, %v364_v1  ;;  %1390 = vmatpush3.bf16.msra.mxu0 %v1389_v57  ;;  %1414 = vmatpush3.bf16.msra.mxu1 %v1389_v57  ;;  %v427_v57 = vadd.s32 4294967256, %v2742_v35  ;;  %v2770_v0 = vsub.s32 %v413_v38, %v2744_v11  ;;  %v2773_v1 = vsub.s32 %v420_v39, %v2744_v11 }
 0x119   : > { %1391 = vmatprep.subr.bf16.mxu0 %v2123_v56  ;;  %1415 = vmatprep.subr.bf16.mxu1 %v2123_v56  ;;  %v448_v3 = vadd.s32 4294967232, %v2742_v35  ;;  %v403_v4 = vrot.slane %v2665_v51, %v2762_v61  ;;  %v2787_v29 = vsub.s32 %v441_v9, %v2744_v11  ;;  %v462_v16 = vadd.s32 4294967216, %v2742_v35 }
 0x11a   : > { %v2776_v2 = vsub.s32 %v427_v57, %v2744_v11  ;;  %v417_v28 = vrot.slane %v2682_v20, %v2770_v0  ;;  %v424_v26 = vrot.slane %v2685_v50, %v2773_v1  ;;  %v469_v54 = vadd.s32 4294967208, %v2742_v35 }
 0x11b   : > { %v2794_v22 = vsub.s32 %v448_v3, %v2744_v11  ;;  %v405_v51 = vsel %vm404_vm1, %v403_v4, %v398_v60  ;;  %v445_v20 = vrot.slane %v2709_v19, %v2787_v29  ;;  %v476_v19 = vadd.s32 4294967200, %v2742_v35 }
 0x11c   : > { %1393 = vmatpush3.bf16.msra.mxu0 %v1392_v5  ;;  %1417 = vmatpush3.bf16.msra.mxu1 %v1392_v5  ;;  %v410_v5 = vrot.slane %v2668_v24, %v2765_v31  ;;  %v431_v24 = vrot.slane %v2688_v23, %v2776_v2  ;;  %v2826_v36 = vsub.s32 %v469_v54, %v2744_v11  ;;  %v483_v39 = vadd.s32 4294967192, %v2742_v35 }
 0x11d   : > { %1394 = vmatprep.subr.bf16.mxu0 %v2123_v56  ;;  %1418 = vmatprep.subr.bf16.mxu1 %v2123_v56  ;;  %v452_v23 = vrot.slane %v2717_v12, %v2794_v22  ;;  %v2823_v12 = vsub.s32 %v462_v16, %v2744_v11  ;;  %v490_v4 = vadd.s32 4294967184, %v2742_v35  ;;  %v3134_v16 = vld [vmem:[#allocation10_spill] sm:$0xff] }
 0x11e   : > { %v412_v55 = vsel %vm411_vm2, %v410_v5, %v405_v51  ;;  %v473_v9 = vrot.slane %v2728_v62, %v2826_v36  ;;  %v497_v62 = vadd.s32 4294967176, %v2742_v35  ;;  %v595_v51 = vrot.slane %v3074_v41, %v2750_v34 }
 0x11f   : > { %v419_v50 = vsel %vm418_vm3, %v417_v28, %v412_v55  ;;  %v493_v28 = vsub.s32 %v490_v4, %v2744_v11  ;;  %v609_v55 = vrot.slane %v3075_v42, %v2770_v0  ;;  %v614_v42 = vrot.slane %v3078_v45, %v2773_v1 }
 0x120   : > { %1396 = vmatpush3.bf16.msra.mxu0 %v1395_v7  ;;  %1420 = vmatpush3.bf16.msra.mxu1 %v1395_v7  ;;  %v2784_v7 = vsub.s32 %v434_v6, %v2744_v11  ;;  %v426_v58 = vsel %vm425_vm4, %v424_v26, %v419_v50  ;;  %v466_v6 = vrot.slane %v2723_v10, %v2823_v12 }
 0x121   : > { %1397 = vmatprep.subr.bf16.mxu0 %v2123_v56  ;;  %1421 = vmatprep.subr.bf16.mxu1 %v2123_v56  ;;  %v433_v17 = vsel %vm432_vm5, %v431_v24, %v426_v58  ;;  %v500_v26 = vsub.s32 %v497_v62, %v2744_v11  ;;  %v619_v34 = vrot.slane %v3077_v44, %v2776_v2  ;;  %v3131_v2 = vld [vmem:[#allocation9_spill] sm:$0xff] }
 0x122   : > { %v438_v25 = vrot.slane %v2706_v59, %v2784_v7  ;;  %v644_v1 = vrot.slane %v3084_v53, %v2823_v12 }
 0x123   : > { %v501_v41 = vrot.slane %v2740_v32, %v500_v26  ;;  %v624_v32 = vrot.slane %v3080_v47, %v2784_v7  ;;  %v669_v54 = vrot.slane %v3134_v16, %v500_v26  ;;  %v982_v16 = vld [vmem:[%s2257_s11 + $0x98] sm:$0xff] }
 0x124   : > { %1399 = vmatpush3.bf16.msra.mxu0 %v2670_v27  ;;  %1423 = vmatpush3.bf16.msra.mxu1 %v2670_v27  ;;  %v455_v27 = vadd.s32 4294967224, %v2742_v35  ;;  %v440_v37 = vsel %vm439_vm6, %v438_v25, %v433_v17  ;;  %v599_v35 = vrot.slane %v3073_v40, %v2762_v61  ;;  %v494_v25 = vrot.slane %v2737_v33, %v493_v28 }
 0x125   : > { %1400 = vmatprep.subr.bf16.mxu0 %v2123_v56  ;;  %1424 = vmatprep.subr.bf16.mxu1 %v2123_v56  ;;  %v447_v57 = vsel %vm446_vm7, %v445_v20, %v440_v37 }
 0x126   : > { %v2816_v59 = vsub.s32 %v455_v27, %v2744_v11  ;;  %v454_v60 = vsel %vm453_vm8, %v452_v23, %v447_v57  ;;  %v600_v40 = vsel %vm404_vm1, %v599_v35, %v595_v51  ;;  %vm743_vm1 = vcmask 64512  }
 0x128   : > { %1402 = vmatpush3.bf16.msra.mxu0 %v2692_v18  ;;  %1426 = vmatpush3.bf16.msra.mxu1 %v2692_v18  ;;  %v459_v38 = vrot.slane %v2720_v15, %v2816_v59  ;;  %v2834_v18 = vsub.s32 %v476_v19, %v2744_v11  ;;  %v2846_v15 = vsub.s32 %v483_v39, %v2744_v11 }
 0x129   : > { %1403 = vmatprep.subr.bf16.mxu0 %v2123_v56  ;;  %1427 = vmatprep.subr.bf16.mxu1 %v2123_v56  ;;  %v639_v44 = vrot.slane %v3081_v48, %v2816_v59 }
 0x12a   : > { %v480_v3 = vrot.slane %v2731_v13, %v2834_v18  ;;  %v461_v10 = vsel %vm460_vm9, %v459_v38, %v454_v60  ;;  %v487_v5 = vrot.slane %v2734_v8, %v2846_v15  ;;  %v604_v8 = vrot.slane %v3076_v43, %v2765_v31 }
 0x12b   : > { %v468_v13 = vsel %vm467_vm10, %v466_v6, %v461_v10  ;;  %v634_v31 = vrot.slane %v3082_v49, %v2794_v22  ;;  %v654_v7 = vrot.slane %v3131_v2, %v2834_v18  ;;  %v975_v2 = vld [vmem:[%s2257_s11 + $0x60] sm:$0xff] }
 0x12c   : > { %1405 = vmatpush3.bf16.msra.mxu0 %v2694_v21  ;;  %1429 = vmatpush3.bf16.msra.mxu1 %v2694_v21  ;;  %v475_v21 = vsel %vm474_vm11, %v473_v9, %v468_v13  ;;  %v605_v43 = vsel %vm411_vm2, %v604_v8, %v600_v40  ;;  %v966_v40 = vld [vmem:[%s2257_s11 + $0x18] sm:$0xff] }
 0x12d   : > { %1406 = vmatprep.subr.bf16.mxu0 %v2123_v56  ;;  %1430 = vmatprep.subr.bf16.mxu1 %v2123_v56  ;;  %v482_v24 = vsel %vm481_vm12, %v480_v3, %v475_v21  ;;  %v964_v21 = vld [vmem:[%s2257_s11 + $0x8] sm:$0xff] }
 0x12e   : > { %v489_v20 = vsel %vm488_vm13, %v487_v5, %v482_v24  ;;  %v968_v5 = vld [vmem:[%s2257_s11 + $0x28] sm:$0xff] }
 0x12f   : > { %v496_v33 = vsel %vm495_vm14, %v494_v25, %v489_v20  ;;  %v970_v20 = vld [vmem:[%s2257_s11 + $0x38] sm:$0xff] }
 0x130   : > { %1408 = vmatpush3.bf16.msra.mxu0 %v2711_v14  ;;  %1432 = vmatpush3.bf16.msra.mxu1 %v2711_v14  ;;  %v610_v14 = vsel %vm418_vm3, %v609_v55, %v605_v43  ;;  %v503_v45 = vsel %vm502_vm15, %v501_v41, %v496_v33  ;;  %v969_v55 = vld [vmem:[%s2257_s11 + $0x30] sm:$0xff] }
 0x131   : > { %1409 = vmatprep.subr.bf16.mxu0 %v2123_v56  ;;  %1433 = vmatprep.subr.bf16.mxu1 %v2123_v56  ;;  %v615_v61 = vsel %vm425_vm4, %v614_v42, %v610_v14  ;;  %v629_v56 = vrot.slane %v3079_v46, %v2787_v29  ;;  %v376_v46 = vld [vmem:[%s3045_s2] sm:$0xff]  ;;  %v965_v41 = vld [vmem:[%s2257_s11 + $0x10] sm:$0xff] }
 0x132   : > { %v620_v0 = vsel %vm432_vm5, %v619_v34, %v615_v61  ;;  %v3132_v29 = vld [vmem:[#allocation8_spill] sm:$0xff]  ;;  %v973_v61 = vld [vmem:[%s2257_s11 + $0x50] sm:$0xff] }
 0x133   : > { %v625_v47 = vsel %vm439_vm6, %v624_v32, %v620_v0  ;;  %v659_v22 = vrot.slane %v3132_v29, %v2846_v15 }
 0x134   : > { %1411 = vmatpush3.bf16.msra.mxu0 %v2725_v63  ;;  %1435 = vmatpush3.bf16.msra.mxu1 %v2725_v63  ;;  %v630_v49 = vsel %vm446_vm7, %v629_v56, %v625_v47  ;;  %v649_v63 = vrot.slane %v3083_v52, %v2826_v36  ;;  %v3133_v52 = vld [vmem:[#allocation11_spill] sm:$0xff] }
 0x135   : > { %1378 = vmatprep.subr.mxu1 %v2125_v30  ;;  %1383 = vmatprep.subr.mxu0 %v2125_v30  ;;  %v635_v48 = vsel %vm453_vm8, %v634_v31, %v630_v49  ;;  %v664_v50 = vrot.slane %v3133_v52, %v493_v28  ;;  %v963_v28 = vld [vmem:[%s2257_s11] sm:$0xff]  ;;  %v974_v56 = vld [vmem:[%s2257_s11 + $0x58] sm:$0xff] }
 0x136   : > { %v640_v53 = vsel %vm460_vm9, %v639_v44, %v635_v48  ;;  %v971_v31 = vld [vmem:[%s2257_s11 + $0x40] sm:$0xff]  ;;  %v978_v48 = vld [vmem:[%s2257_s11 + $0x78] sm:$0xff] }
 0x137   : > { %1341 = vmatmul.mubr.f32.vlgmr.msra.gmra.mrb[0].mxu0 %v503_v45  ;;  %v645_v27 = vsel %vm467_vm10, %v644_v1, %v640_v53  ;;  %v972_v45 = vld [vmem:[%s2257_s11 + $0x48] sm:$0xff] }
 0x138   : > { %1384 = vmatpush3.msra.mxu0 %v376_v46  ;;  %1385 = vmatprep.mubr.msk.f32.mxu0 %vm2124_vm0, %v2125_v30  ;;  %v650_v23 = vsel %vm474_vm11, %v649_v63, %v645_v27  ;;  %v977_v63 = vld [vmem:[%s2257_s11 + $0x70] sm:$0xff] }
 0x139   : > { %v655_v58 = vsel %vm481_vm12, %v654_v7, %v650_v23  ;;  %v976_v7 = vld [vmem:[%s2257_s11 + $0x68] sm:$0xff]  ;;  %v981_v23 = vld [vmem:[%s2257_s11 + $0x90] sm:$0xff] }
 0x13a   : > { %v660_v59 = vsel %vm488_vm13, %v659_v22, %v655_v58  ;;  %v980_v58 = vld [vmem:[%s2257_s11 + $0x88] sm:$0xff] }
 0x13b   : > { %v665_v19 = vsel %vm495_vm14, %v664_v50, %v660_v59 }
 0x13c   : > { %v670_v17 = vsel %vm502_vm15, %v669_v54, %v665_v19  ;;  %v979_v54 = vld [vmem:[%s2257_s11 + $0x80] sm:$0xff] }
 0x13d   : > { %1376 = vmatmul.mubr.f32.vlgmr.msra.gmra.mrb[0].mxu1 %v670_v17 }
 0x13e   : > { %1379 = vmatpush3.msra.mxu1 %v376_v46  ;;  %1380 = vmatprep.mubr.msk.f32.mxu1 %vm2124_vm0, %v2125_v30  ;;  %v898_v30 = vsub.s32 0, %v2744_v11  ;;  %v967_v11 = vld [vmem:[%s2257_s11 + $0x20] sm:$0xff] }
 0x20a   : > { %v571_v12 = vpop.f32.mrb[0].mxu0 }
 0x20b   : > { %v575_v36 = vmax.f32 %v571_v12, 0.0  ;;  %v1342_v37 = vpop.f32.mrb[1].mxu0 }
 0x20d   : > { %1386 = vmatmul.mubr.msk.f32.vlgmr.msra.gmra.mrb[2].mxu0 %vm743_vm1, %v575_v36 }
 0x210   : > { %v738_v38 = vpop.f32.mrb[0].mxu1 }
 0x211   : > { %v742_v18 = vmax.f32 %v738_v38, 0.0  ;;  %v1377_v39 = vpop.f32.mrb[1].mxu1  ;;  %v985_v38 = vld [vmem:[%s2257_s11 + $0xb0] sm:$0xff] }
 0x212   : > { %v983_v39 = vld [vmem:[%s2257_s11 + $0xa0] sm:$0xff] }
 0x213   : > { %1381 = vmatmul.mubr.msk.f32.vlgmr.msra.gmra.mrb[2].mxu1 %vm743_vm1, %v742_v18  ;;  %v986_v18 = vld [vmem:[%s2257_s11 + $0xb8] sm:$0xff] }
 0x2e0   : > { %v886_v57 = vpop.f32.mrb[2].mxu0 }
 0x2e1   : > { %v1387_v6 = vpop.f32.mrb[3].mxu0 }
 0x2e6   : > { %v813_v9 = vpop.f32.mrb[2].mxu1 }
 0x2e7   : > { %v887_v60 = vadd.f32 %v886_v57, %v813_v9  ;;  %v1382_v3 = vpop.f32.mrb[3].mxu1  ;;  %v984_v57 = vld [vmem:[%s2257_s11 + $0xa8] sm:$0xff] }
 0x2e9   : > { %v1262_v15 = vmul.f32 -1.442695, %v887_v60 }
 0x2eb   : > { %1754 = vpow2.f32 %v1262_v15 }
 0x2f5   : > { %v1755_v4 = vpop.eup %1754 }
 0x2f6   : > { %v893_v10 = vadd.f32 1.0, %v1755_v4 }
 0x2f8   : > { %1756 = vrcp.f32 %v893_v10  ;;  %v989_v10 = vld [vmem:[%s2257_s11 + $0xd0] sm:$0xff] }
 0x302   : > { %v1757_v62 = vpop.eup %1756 }
 0x303   : > { %v899_v13 = vrot.slane %v1757_v62, %v898_v30  ;;  %v990_v30 = vld [vmem:[%s2257_s11 + $0xd8] sm:$0xff]  ;;  %v987_v62 = vld [vmem:[%s2257_s11 + $0xc0] sm:$0xff] }
 0x305   : > { %909 = vbcast.lane.b32.xlu1 %v899_v13, 272  ;;  %901 = vbcast.lane.b32.xlu0 %v899_v13, 256 }
 0x309   : > { %913 = vbcast.lane.b32.xlu1 %v899_v13, 280  ;;  %905 = vbcast.lane.b32.xlu0 %v899_v13, 264 }
 0x30d   : > { %921 = vbcast.lane.b32.xlu1 %v899_v13, 296  ;;  %917 = vbcast.lane.b32.xlu0 %v899_v13, 288 }
 0x311   : > { %929 = vbcast.lane.b32.xlu1 %v899_v13, 312  ;;  %925 = vbcast.lane.b32.xlu0 %v899_v13, 304 }
 0x315   : > { %937 = vbcast.lane.b32.xlu1 %v899_v13, 328  ;;  %933 = vbcast.lane.b32.xlu0 %v899_v13, 320 }
 0x319   : > { %945 = vbcast.lane.b32.xlu1 %v899_v13, 344  ;;  %941 = vbcast.lane.b32.xlu0 %v899_v13, 336 }
 0x31d   : > { %953 = vbcast.lane.b32.xlu1 %v899_v13, 360  ;;  %949 = vbcast.lane.b32.xlu0 %v899_v13, 352 }
 0x321   : > { %961 = vbcast.lane.b32.xlu1 %v899_v13, 376  ;;  %957 = vbcast.lane.b32.xlu0 %v899_v13, 368  ;;  %v988_v13 = vld [vmem:[%s2257_s11 + $0xc8] sm:$0xff] }
 0x377   : > { %v910_v26 = vpop.permute.xlu1 %909  ;;  %v902_v51 = vpop.permute.xlu0 %901 }
 0x378   : > { %v999_v35 = vmul.f32 %v967_v11, %v910_v26  ;;  %v1000_v24 = vmul.f32 %v968_v5, %v910_v26  ;;  %v995_v25 = vmul.f32 %v963_v28, %v902_v51  ;;  %v996_v8 = vmul.f32 %v964_v21, %v902_v51 }
 0x37a   : > { %1031 = vst [vmem:[%s2263_s4 + $0x20] sm:$0xff] %v999_v35  ;;  %1032 = vst [vmem:[%s2263_s4 + $0x28] sm:$0xff] %v1000_v24  ;;  %v993_v35 = vld [vmem:[%s2257_s11 + $0xf0] sm:$0xff]  ;;  %v994_v24 = vld [vmem:[%s2257_s11 + $0xf8] sm:$0xff] }
 0x37b   : > { %1027 = vst [vmem:[%s2263_s4] sm:$0xff] %v995_v25  ;;  %1028 = vst [vmem:[%s2263_s4 + $0x8] sm:$0xff] %v996_v8  ;;  %v914_v33 = vpop.permute.xlu1 %913  ;;  %v906_v43 = vpop.permute.xlu0 %905  ;;  %v991_v25 = vld [vmem:[%s2257_s11 + $0xe0] sm:$0xff]  ;;  %v992_v8 = vld [vmem:[%s2257_s11 + $0xe8] sm:$0xff]  ;;  %s1060_s11 = scalar_lea.sflag [#allocation4], %s2253_s5 }
 0x37c   : > { %v1001_v42 = vmul.f32 %v969_v55, %v914_v33  ;;  %v1002_v14 = vmul.f32 %v970_v20, %v914_v33  ;;  %v997_v34 = vmul.f32 %v965_v41, %v906_v43  ;;  %v998_v32 = vmul.f32 %v966_v40, %v906_v43 }
 0x37e   : > { %1033 = vst [vmem:[%s2263_s4 + $0x30] sm:$0xff] %v1001_v42  ;;  %1034 = vst [vmem:[%s2263_s4 + $0x38] sm:$0xff] %v1002_v14 }
 0x37f   : > { %1029 = vst [vmem:[%s2263_s4 + $0x10] sm:$0xff] %v997_v34  ;;  %1030 = vst [vmem:[%s2263_s4 + $0x18] sm:$0xff] %v998_v32  ;;  %v922_v0 = vpop.permute.xlu1 %921  ;;  %v918_v44 = vpop.permute.xlu0 %917 }
 0x380   : > { %v1005_v47 = vmul.f32 %v973_v61, %v922_v0  ;;  %v1006_v1 = vmul.f32 %v974_v56, %v922_v0  ;;  %v1003_v46 = vmul.f32 %v971_v31, %v918_v44  ;;  %v1004_v49 = vmul.f32 %v972_v45, %v918_v44 }
 0x382   : > { %1037 = vst [vmem:[%s2263_s4 + $0x50] sm:$0xff] %v1005_v47  ;;  %1038 = vst [vmem:[%s2263_s4 + $0x58] sm:$0xff] %v1006_v1 }
 0x383   : > { %1035 = vst [vmem:[%s2263_s4 + $0x40] sm:$0xff] %v1003_v46  ;;  %1036 = vst [vmem:[%s2263_s4 + $0x48] sm:$0xff] %v1004_v49  ;;  %v930_v53 = vpop.permute.xlu1 %929  ;;  %v926_v29 = vpop.permute.xlu0 %925 }
 0x384   : > { %v1009_v22 = vmul.f32 %v977_v63, %v930_v53  ;;  %v1010_v27 = vmul.f32 %v978_v48, %v930_v53  ;;  %v1007_v52 = vmul.f32 %v975_v2, %v926_v29  ;;  %v1008_v50 = vmul.f32 %v976_v7, %v926_v29 }
 0x386   : > { %1041 = vst [vmem:[%s2263_s4 + $0x70] sm:$0xff] %v1009_v22  ;;  %1042 = vst [vmem:[%s2263_s4 + $0x78] sm:$0xff] %v1010_v27 }
 0x387   : > { %1039 = vst [vmem:[%s2263_s4 + $0x60] sm:$0xff] %v1007_v52  ;;  %1040 = vst [vmem:[%s2263_s4 + $0x68] sm:$0xff] %v1008_v50  ;;  %v938_v59 = vpop.permute.xlu1 %937  ;;  %v934_v19 = vpop.permute.xlu0 %933 }
 0x388   : > { %v1013_v17 = vmul.f32 %v981_v23, %v938_v59  ;;  %v1014_v12 = vmul.f32 %v982_v16, %v938_v59  ;;  %v1011_v36 = vmul.f32 %v979_v54, %v934_v19  ;;  %v1012_v37 = vmul.f32 %v980_v58, %v934_v19 }
 0x38a   : > { %1045 = vst [vmem:[%s2263_s4 + $0x90] sm:$0xff] %v1013_v17  ;;  %1046 = vst [vmem:[%s2263_s4 + $0x98] sm:$0xff] %v1014_v12 }
 0x38b   : > { %1043 = vst [vmem:[%s2263_s4 + $0x80] sm:$0xff] %v1011_v36  ;;  %1044 = vst [vmem:[%s2263_s4 + $0x88] sm:$0xff] %v1012_v37  ;;  %v946_v6 = vpop.permute.xlu1 %945  ;;  %v942_v9 = vpop.permute.xlu0 %941 }
 0x38c   : > { %v1017_v60 = vmul.f32 %v985_v38, %v946_v6  ;;  %v1018_v3 = vmul.f32 %v986_v18, %v946_v6  ;;  %v1015_v15 = vmul.f32 %v983_v39, %v942_v9  ;;  %v1016_v4 = vmul.f32 %v984_v57, %v942_v9 }
 0x38e   : > { %1049 = vst [vmem:[%s2263_s4 + $0xb0] sm:$0xff] %v1017_v60  ;;  %1050 = vst [vmem:[%s2263_s4 + $0xb8] sm:$0xff] %v1018_v3 }
 0x38f   : > { %1047 = vst [vmem:[%s2263_s4 + $0xa0] sm:$0xff] %v1015_v15  ;;  %1048 = vst [vmem:[%s2263_s4 + $0xa8] sm:$0xff] %v1016_v4  ;;  %v954_v11 = vpop.permute.xlu1 %953  ;;  %v950_v5 = vpop.permute.xlu0 %949 }
 0x390   : > { %v1021_v28 = vmul.f32 %v989_v10, %v954_v11  ;;  %v1022_v21 = vmul.f32 %v990_v30, %v954_v11  ;;  %v1019_v26 = vmul.f32 %v987_v62, %v950_v5  ;;  %v1020_v51 = vmul.f32 %v988_v13, %v950_v5 }
 0x392   : > { %1053 = vst [vmem:[%s2263_s4 + $0xd0] sm:$0xff] %v1021_v28  ;;  %1054 = vst [vmem:[%s2263_s4 + $0xd8] sm:$0xff] %v1022_v21 }
 0x393   : > { %1051 = vst [vmem:[%s2263_s4 + $0xc0] sm:$0xff] %v1019_v26  ;;  %1052 = vst [vmem:[%s2263_s4 + $0xc8] sm:$0xff] %v1020_v51  ;;  %v962_v55 = vpop.permute.xlu1 %961  ;;  %v958_v20 = vpop.permute.xlu0 %957 }
 0x394   : > { %v1025_v41 = vmul.f32 %v993_v35, %v962_v55  ;;  %v1026_v40 = vmul.f32 %v994_v24, %v962_v55  ;;  %v1023_v33 = vmul.f32 %v991_v25, %v958_v20  ;;  %v1024_v43 = vmul.f32 %v992_v8, %v958_v20 }
 0x396   : > { %1057 = vst [vmem:[%s2263_s4 + $0xf0] sm:$0xff] %v1025_v41  ;;  %1058 = vst [vmem:[%s2263_s4 + $0xf8] sm:$0xff] %v1026_v40 }
 0x397   : > { %1055 = vst [vmem:[%s2263_s4 + $0xe0] sm:$0xff] %v1023_v33  ;;  %1056 = vst [vmem:[%s2263_s4 + $0xe8] sm:$0xff] %v1024_v43 }
 0x398   : > { %1801 = shalt.err (!%p1798_p4)
}
 0x399   : > { %s1802_s4 = scalar_lea.hbm %s2993_s16, 4096  ;;  %s1806_s20 = scalar_lea.hbm %s3046_s3, 8192 }
 0x39a   : > { %p1803_p5 = scmp.ne.s32.totalorder %s2993_s16, %s1802_s4  ;;  %p1807_p1 = scmp.lt.u32.totalorder %s2993_s16, %s3046_s3 }
 0x39b   : > { %p1808_p3 = scmp.lt.u32.totalorder %s1806_s20, %s1802_s4  ;;  %p1810_p11 = scmp.lt.u32.totalorder %s1802_s4, %s2993_s16 }
 0x39c   : > { %p1804_p7 = pnand %p1803_p5, %p3135_p12 }
 0x39d   : > { %p1809_p6 = por %p1808_p3, %p1807_p1 }
 0x39e   : > { %p1805_p9 = pneg %p1804_p7 }
 0x39f   : > { %p1811_p13 = por %p1810_p11, %p1809_p6 }
 0x3a1   : > { %p1812_p8 = pnand %p1811_p13, %p1805_p9 }
 0x3a3   : > { %1815 = shalt.err (!%p1812_p8)
}
 0x3a4   : > { %s2127_s27 = smov 256   ;;  %s2128_s28 = smov 16  }
 0x3a5   : > { %1439 = dma.vmem_to_hbm [thread:$0]  (%p3135_p12), %s2995_s30, 4096, %s2993_s16, %s1060_s11, %s2127_s27, %s2127_s27, %s2128_s28  }
 0x3a6 PF: > { %s1088_s29 = sand.u32 1, %s1974_s12   ;;  %p3136_p10 = scmp.ne.s32.totalorder %s3055_s25, 0 }
 0x3a7   : > { %p3137_p0 = scmp.ge.s32.totalorder %s1986_s15, 2  ;;  %s1089_s9 = scalar_lea.sflag [#allocation4], %s1088_s29 }
 0x3a9   : > { %p1446_p2 = pnand %p3137_p0, %p3136_p10 }
 0x3ab   : > { %1969 = dma.done.wait (!%p1446_p2), %s1089_s9, 4096  }
 0x3ac   : > { %1971 = vsyncadd (!%p1446_p2), %s1089_s9, 4294963200  ;;  %p16_p4 = scmp.ge.s32.totalorder %s2174_s18, 4   ;;  %s3138_s12 = smov %s1978_s13 }
 0x3ad   : > { %s3139_s13 = smov %s1982_s14  ;;  %s3140_s14 = smov %s2186_s21 }
 0x3ae   : > { %s3141_s15 = smov %s2174_s18  ;;  %18 = sbr.rel (!%p16_p4) target bundleno = 5 (0x5), region = 96 }
 0x3b5   :  { %1094 = vsyncpa [#allocation3], 1 }
 0x3b6   :  { %1096 = vsyncpa [#allocation3 + $0x1], 1 }
 0x3b7   :  { %1097 = vsyncpa [#allocation4], 1 }
 0x3b8   :  { %1099 = vsyncpa [#allocation4 + $0x1], 1 }

</bundles_post_ra>
